<compile_context>
chip_gen: v5e
topology: v5e:2x2
jax: 0.10.0
libtpu: 0.0.40
codegen_flags: <defaults>
</compile_context>

<pallas_src>
import functools

import jax
import jax.numpy as jnp
import numpy as np
from jax.experimental import pallas as pl
from jax.experimental.pallas import tpu as pltpu


# -----------------------------------------------------------------------------
# Host-side (one-time) packing helpers
# -----------------------------------------------------------------------------
def _banded_conv_weight(w_hwio, width_in, pad=1):
    """Conv weight (k,k,Cin,Cout) -> k band matrices (Win*Cin, Wout*Cout), one per
    vertical tap kh, so the stride-1 pad-1 conv along W (incl. zero padding)
    becomes a plain matmul on a lane-dense (rows, width*channels) activation."""
    k, _, cin, cout = w_hwio.shape
    wc = width_in + 2 * pad - k + 1
    out = np.zeros((k, width_in * cin, wc * cout), np.float32)
    wnp = np.asarray(w_hwio, np.float32)
    for kh in range(k):
        for kw in range(k):
            for w in range(wc):
                wi = w + kw - pad
                if 0 <= wi < width_in:
                    out[kh, wi * cin:(wi + 1) * cin,
                        w * cout:(w + 1) * cout] = wnp[kh, kw]
    return jnp.asarray(out)


def _row_pool_selectors(h_out, h_in):
    """(2, h_out, h_in) 0/1 matrices selecting the even / odd rows of a 2x2 pool."""
    sel = np.zeros((2, h_out, h_in), np.float32)
    for h in range(h_out):
        sel[0, h, 2 * h] = 1.0
        sel[1, h, 2 * h + 1] = 1.0
    return jnp.asarray(sel)


def _col_pool_selectors(w_in, c):
    """(2, w_in*c, (w_in//2)*c) 0/1 matrices selecting the even / odd pixels of a
    2x2 pool along the lane-folded (w*c) dimension."""
    w_out = w_in // 2
    sel = np.zeros((2, w_in * c, w_out * c), np.float32)
    for w in range(w_out):
        for ch in range(c):
            sel[0, (2 * w) * c + ch, w * c + ch] = 1.0
            sel[1, (2 * w + 1) * c + ch, w * c + ch] = 1.0
    return jnp.asarray(sel)


def _stack_fc1(w_fc1, c2, h2, w2):
    """fc1 weight (c2*h2*w2, F), rows in torch NCHW-flatten order (c,h,w) ->
    (h2, w2*c2, F) so fc1 is a sum over pooled rows (no runtime flatten)."""
    f = w_fc1.shape[1]
    out = np.zeros((h2, w2 * c2, f), np.float32)
    wnp = np.asarray(w_fc1, np.float32)
    for hh in range(h2):
        for ww in range(w2):
            for cc in range(c2):
                out[hh, ww * c2 + cc, :] = wnp[cc * h2 * w2 + hh * w2 + ww, :]
    return jnp.asarray(out)


# -----------------------------------------------------------------------------
# The fused kernel (one batch sample per grid step)
# -----------------------------------------------------------------------------
def cnn_fused_kernel(x_ref, w1b_ref, b1_ref, r1_ref, c1_ref,
                     w2b_ref, b2_ref, r2_ref, c2_ref,
                     wf1_ref, bf1_ref, wf2_ref, bf2_ref,
                     o_ref,
                     xp1_ref, xp2_ref, *, k1, k2):
    f32 = jnp.float32

    def conv_relu_pool(xp_ref, wb_ref, b_ref, rsel_ref, csel_ref, k, x_int):
        """pad-1 stride-1 conv (k banded matmuls) + bias + ReLU + 2x2 max pool.
        xp_ref : (Hin+2, Win*Cin) row-padded scratch, x_int : (Hin, Win*Cin)."""
        hp, wc_in = xp_ref.shape
        hin = hp - 2
        hc = hp - k + 1                       # conv output rows
        # zero only the two halo ROWS (W padding lives inside the band weights)
        xp_ref[0:1, :] = jnp.zeros((1, wc_in), f32)
        xp_ref[hp - 1:hp, :] = jnp.zeros((1, wc_in), f32)
        xp_ref[1:hin + 1, :] = x_int
        acc = jnp.dot(xp_ref[0:hc, :], wb_ref[0], preferred_element_type=f32)
        for kh in range(1, k):
            acc = acc + jnp.dot(xp_ref[kh:kh + hc, :], wb_ref[kh],
                                preferred_element_type=f32)
        y = jnp.maximum(acc + b_ref[...], 0.0)        # (hc, Wout*Cout) lane-dense
        # 2x2 max pool: row pairs via left 0/1-selection matmuls, lane pairs via
        # right 0/1-selection matmuls -> no strided reads, no relayouts.
        ph = jnp.maximum(jnp.dot(rsel_ref[0], y, preferred_element_type=f32),
                         jnp.dot(rsel_ref[1], y, preferred_element_type=f32))
        return jnp.maximum(jnp.dot(ph, csel_ref[0], preferred_element_type=f32),
                           jnp.dot(ph, csel_ref[1], preferred_element_type=f32))

    p1 = conv_relu_pool(xp1_ref, w1b_ref, b1_ref, r1_ref, c1_ref, k1, x_ref[...])
    p2 = conv_relu_pool(xp2_ref, w2b_ref, b2_ref, r2_ref, c2_ref, k2, p1)

    # fc1 as an accumulation over pooled rows (no flatten), then ReLU, then fc2.
    h2 = p2.shape[0]
    acc = jnp.dot(p2[0:1, :], wf1_ref[0], preferred_element_type=f32)
    for r in range(1, h2):
        acc = acc + jnp.dot(p2[r:r + 1, :], wf1_ref[r], preferred_element_type=f32)
    hid = jnp.maximum(acc + bf1_ref[...], 0.0)
    o_ref[...] = jnp.dot(hid, wf2_ref[...], preferred_element_type=f32) + bf2_ref[...]


# -----------------------------------------------------------------------------
# Wrapper: one pallas_call, grid over the batch, weights VMEM-resident.
# -----------------------------------------------------------------------------
def cnn_forward(x_nchw, packed):
    x = x_nchw.astype(jnp.float32)
    n, cin, hgt, wid = x.shape
    assert cin == 1, "module spec: conv1 has a single input channel"
    x = x.reshape(n, hgt, wid)

    w1b, b1 = packed["w1_banded"], packed["b1_row"]
    r1, c1s = packed["pool1_rows"], packed["pool1_cols"]
    w2b, b2 = packed["w2_banded"], packed["b2_row"]
    r2, c2s = packed["pool2_rows"], packed["pool2_cols"]
    wf1, bf1 = packed["wf1_stack"], packed["bf1_row"]
    wf2, bf2 = packed["wf2"], packed["bf2_row"]

    k1 = w1b.shape[0]
    wc1, hc1 = wid + 3 - k1, hgt + 3 - k1
    assert wc1 % 2 == 0 and hc1 % 2 == 0
    c1 = w1b.shape[2] // wc1
    h1, w1 = hc1 // 2, wc1 // 2

    k2 = w2b.shape[0]
    assert w2b.shape[1] == w1 * c1
    wc2, hc2 = w1 + 3 - k2, h1 + 3 - k2
    assert wc2 % 2 == 0 and hc2 % 2 == 0
    c2 = w2b.shape[2] // wc2
    h2, w2 = hc2 // 2, wc2 // 2
    assert wf1.shape[0] == h2 and wf1.shape[1] == w2 * c2, \
        "fc1_in_features mismatch with conv stack"
    n_out = wf2.shape[1]

    kernel = functools.partial(cnn_fused_kernel, k1=k1, k2=k2)

    def resident(a):                       # full block, constant index map
        nd = a.ndim
        return pl.BlockSpec(a.shape, lambda i, _nd=nd: (0,) * _nd)

    out = pl.pallas_call(
        kernel,
        out_shape=jax.ShapeDtypeStruct((n, 1, n_out), jnp.float32),
        grid=(n,),
        in_specs=[pl.BlockSpec((None, hgt, wid), lambda i: (i, 0, 0))] +
                 [resident(a) for a in (w1b, b1, r1, c1s, w2b, b2, r2, c2s,
                                        wf1, bf1, wf2, bf2)],
        out_specs=pl.BlockSpec((None, 1, n_out), lambda i: (i, 0, 0)),
        scratch_shapes=[
            pltpu.VMEM((hgt + 2, wid), jnp.float32),       # row-padded conv1 input
            pltpu.VMEM((h1 + 2, w1 * c1), jnp.float32),    # row-padded conv2 input
        ],
        compiler_params=pltpu.CompilerParams(dimension_semantics=("parallel",)),
    )(x, w1b, b1, r1, c1s, w2b, b2, r2, c2s, wf1, bf1, wf2, bf2)
    return out.reshape(n, n_out)


# -----------------------------------------------------------------------------
# Synthetic parameters (PyTorch-style uniform init) + one-time host-side packing
# -----------------------------------------------------------------------------
def init_params(key, config):
    """Torch-semantics layouts: conv weights (KH, KW, Cin, Cout); fc weights
    (in, out); fc1 rows in torch's NCHW-flatten order (c, h, w)."""
    c1 = config["conv1_out_channels"]
    c2 = config["conv2_out_channels"]
    k1 = config["conv1_kernel_size"]
    k2 = config["conv2_kernel_size"]
    f_in = config["fc1_in_features"]
    f_mid = config["fc1_out_features"]
    ks = jax.random.split(key, 8)

    def u(k, shape, fan_in):
        bound = 1.0 / float(fan_in) ** 0.5
        return jax.random.uniform(k, shape, jnp.float32, -bound, bound)

    return dict(
        w_conv1=u(ks[0], (k1, k1, 1, c1), 1 * k1 * k1),
        b_conv1=u(ks[1], (c1,), 1 * k1 * k1),
        w_conv2=u(ks[2], (k2, k2, c1, c2), c1 * k2 * k2),
        b_conv2=u(ks[3], (c2,), c1 * k2 * k2),
        w_fc1=u(ks[4], (f_in, f_mid), f_in),
        b_fc1=u(ks[5], (f_mid,), f_in),
        w_fc2=u(ks[6], (f_mid, 10), f_mid),
        b_fc2=u(ks[7], (10,), f_mid),
    )


def pack_params(params, input_hw):
    """One-time host-side repack (zero runtime cost): banded conv weights, tiled
    bias rows, 0/1 pooling selectors, and fc1 stacked by pooled row in the
    kernel's (w, c) lane order (identical math to torch's NCHW flatten)."""
    kh1, _, _, c1 = params["w_conv1"].shape
    kh2, _, _, c2 = params["w_conv2"].shape
    f_in, f_mid = params["w_fc1"].shape
    h, w = input_hw
    hc1, wc1 = h + 3 - kh1, w + 3 - kh1
    h1, w1 = hc1 // 2, wc1 // 2
    hc2, wc2 = h1 + 3 - kh2, w1 + 3 - kh2
    h2, w2 = hc2 // 2, wc2 // 2
    assert f_in == c2 * h2 * w2, "fc1_in_features mismatch with conv stack"
    n_cls = params["w_fc2"].shape[1]
    return dict(
        w1_banded=_banded_conv_weight(params["w_conv1"], w),
        b1_row=jnp.tile(params["b_conv1"], (wc1,)).reshape(1, wc1 * c1),
        pool1_rows=_row_pool_selectors(h1, hc1),
        pool1_cols=_col_pool_selectors(wc1, c1),
        w2_banded=_banded_conv_weight(params["w_conv2"], w1),
        b2_row=jnp.tile(params["b_conv2"], (wc2,)).reshape(1, wc2 * c2),
        pool2_rows=_row_pool_selectors(h2, hc2),
        pool2_cols=_col_pool_selectors(wc2, c2),
        wf1_stack=_stack_fc1(params["w_fc1"], c2, h2, w2),
        bf1_row=params["b_fc1"].reshape(1, f_mid),
        wf2=params["w_fc2"],
        bf2_row=params["b_fc2"].reshape(1, n_cls),
    )


# -----------------------------------------------------------------------------
# Pure-XLA reference with torch semantics (NCHW), used only for validation.
# -----------------------------------------------------------------------------
def cnn_reference(x_nchw, params):
    x = x_nchw.astype(jnp.float32)

    def block(z, w_hwio, b):
        z = jax.lax.conv_general_dilated(
            z, w_hwio, window_strides=(1, 1), padding=((1, 1), (1, 1)),
            dimension_numbers=("NCHW", "HWIO", "NCHW"),
            precision=jax.lax.Precision.HIGHEST)
        z = jnp.maximum(z + b[None, :, None, None], 0.0)
        n, c, hh, ww = z.shape
        return jnp.max(z.reshape(n, c, hh // 2, 2, ww // 2, 2), axis=(3, 5))

    x = block(x, params["w_conv1"], params["b_conv1"])
    x = block(x, params["w_conv2"], params["b_conv2"])
    x = x.reshape(x.shape[0], -1)                      # NCHW flatten: (c, h, w)
    x = jnp.maximum(
        jnp.dot(x, params["w_fc1"], precision=jax.lax.Precision.HIGHEST)
        + params["b_fc1"], 0.0)
    return (jnp.dot(x, params["w_fc2"], precision=jax.lax.Precision.HIGHEST)
            + params["b_fc2"])


if __name__ == "__main__":
    # 16x16 single-channel input -> two (pad-1 conv + 2x2 pool) stages -> 4x4
    # spatial, so fc1_in_features = conv2_out_channels * 4 * 4.
    config = dict(
        conv1_out_channels=4, conv1_kernel_size=3,
        conv2_out_channels=8, conv2_kernel_size=3,
        fc1_in_features=8 * 4 * 4, fc1_out_features=32,
    )
    key = jax.random.PRNGKey(0)
    pkey, xkey = jax.random.split(key)
    params = init_params(pkey, config)
    packed = pack_params(params, input_hw=(16, 16))
    x = jax.random.normal(xkey, (2, 1, 16, 16), jnp.float32)   # NCHW, like torch

    out = jax.block_until_ready(jax.jit(cnn_forward)(x, packed))
    assert out.shape == (2, 10) and out.dtype == jnp.float32

    # sanity check against the pure-XLA reference of the same module
    ref = jax.block_until_ready(jax.jit(cnn_reference)(x, params))
    err = float(jnp.max(jnp.abs(out - ref)))
    # all-f32 path (f32 MXU matmuls): expect ~1e-6; 1e-4 keeps margin while still
    # catching any layout / permutation mistake.
    assert err < 1e-4, f"mismatch vs reference: max abs err = {err}"

    print("KERNEL_OK")
</pallas_src>

<mosaic_0001>
module attributes {stable_mosaic.version = 11 : i64} {
  func.func @cnn_fused_kernel(%arg0: i32, %arg1: memref<1x16x16xf32, #tpu.memory_space<vmem>>, %arg2: memref<3x16x64xf32, #tpu.memory_space<vmem>>, %arg3: memref<1x64xf32, #tpu.memory_space<vmem>>, %arg4: memref<2x8x16xf32, #tpu.memory_space<vmem>>, %arg5: memref<2x64x32xf32, #tpu.memory_space<vmem>>, %arg6: memref<3x32x64xf32, #tpu.memory_space<vmem>>, %arg7: memref<1x64xf32, #tpu.memory_space<vmem>>, %arg8: memref<2x4x8xf32, #tpu.memory_space<vmem>>, %arg9: memref<2x64x32xf32, #tpu.memory_space<vmem>>, %arg10: memref<4x32x32xf32, #tpu.memory_space<vmem>>, %arg11: memref<1x32xf32, #tpu.memory_space<vmem>>, %arg12: memref<32x10xf32, #tpu.memory_space<vmem>>, %arg13: memref<1x10xf32, #tpu.memory_space<vmem>>, %arg14: memref<1x1x10xf32, #tpu.memory_space<vmem>>, %arg15: memref<18x16xf32, #tpu.memory_space<vmem>>, %arg16: memref<10x32xf32, #tpu.memory_space<vmem>>) attributes {dimension_semantics = [#tpu.dimension_semantics<parallel>], iteration_bounds = array<i64: 2>, scalar_prefetch = 0 : i64, scratch_operands = 2 : i64, tpu.core_type = #tpu.core_type<tc>, window_params = [{transform_indices = @transform_0, window_bounds = array<i64: 1, 16, 16>}, {pipeline_mode = #tpu.pipeline_mode<synchronous>, transform_indices = @transform_1, window_bounds = array<i64: 3, 16, 64>}, {pipeline_mode = #tpu.pipeline_mode<synchronous>, transform_indices = @transform_2, window_bounds = array<i64: 1, 64>}, {pipeline_mode = #tpu.pipeline_mode<synchronous>, transform_indices = @transform_3, window_bounds = array<i64: 2, 8, 16>}, {pipeline_mode = #tpu.pipeline_mode<synchronous>, transform_indices = @transform_4, window_bounds = array<i64: 2, 64, 32>}, {pipeline_mode = #tpu.pipeline_mode<synchronous>, transform_indices = @transform_5, window_bounds = array<i64: 3, 32, 64>}, {pipeline_mode = #tpu.pipeline_mode<synchronous>, transform_indices = @transform_6, window_bounds = array<i64: 1, 64>}, {pipeline_mode = #tpu.pipeline_mode<synchronous>, transform_indices = @transform_7, window_bounds = array<i64: 2, 4, 8>}, {pipeline_mode = #tpu.pipeline_mode<synchronous>, transform_indices = @transform_8, window_bounds = array<i64: 2, 64, 32>}, {pipeline_mode = #tpu.pipeline_mode<synchronous>, transform_indices = @transform_9, window_bounds = array<i64: 4, 32, 32>}, {pipeline_mode = #tpu.pipeline_mode<synchronous>, transform_indices = @transform_10, window_bounds = array<i64: 1, 32>}, {pipeline_mode = #tpu.pipeline_mode<synchronous>, transform_indices = @transform_11, window_bounds = array<i64: 32, 10>}, {pipeline_mode = #tpu.pipeline_mode<synchronous>, transform_indices = @transform_12, window_bounds = array<i64: 1, 10>}, {transform_indices = @transform_13, window_bounds = array<i64: 1, 1, 10>}]} {
    %c0 = arith.constant 0 : index
    %c0_0 = arith.constant 0 : index
    %c0_1 = arith.constant 0 : index
    %0 = vector.load %arg1[%c0, %c0_0, %c0_1] : memref<1x16x16xf32, #tpu.memory_space<vmem>>, vector<1x16x16xf32>
    %1 = vector.shape_cast %0 : vector<1x16x16xf32> to vector<16x16xf32>
    %cst = arith.constant 0.000000e+00 : f32
    %2 = vector.broadcast %cst : f32 to vector<1x16xf32>
    %c0_2 = arith.constant 0 : index
    %c0_3 = arith.constant 0 : index
    %3 = vector.load %arg15[%c0_2, %c0_3] : memref<18x16xf32, #tpu.memory_space<vmem>>, vector<1x16xf32>
    tpu.vector_store %arg15[%c0_2, %c0_3], %2 {strides = array<i32>} : memref<18x16xf32, #tpu.memory_space<vmem>>, vector<1x16xf32>,
    %cst_4 = arith.constant 0.000000e+00 : f32
    %4 = vector.broadcast %cst_4 : f32 to vector<1x16xf32>
    %c17 = arith.constant 17 : index
    %c0_5 = arith.constant 0 : index
    %5 = vector.load %arg15[%c17, %c0_5] : memref<18x16xf32, #tpu.memory_space<vmem>>, vector<1x16xf32>
    tpu.vector_store %arg15[%c17, %c0_5], %4 {strides = array<i32>} : memref<18x16xf32, #tpu.memory_space<vmem>>, vector<1x16xf32>,
    %c1 = arith.constant 1 : index
    %c0_6 = arith.constant 0 : index
    %6 = vector.load %arg15[%c1, %c0_6] : memref<18x16xf32, #tpu.memory_space<vmem>>, vector<16x16xf32>
    tpu.vector_store %arg15[%c1, %c0_6], %1 {strides = array<i32>} : memref<18x16xf32, #tpu.memory_space<vmem>>, vector<16x16xf32>,
    %c0_7 = arith.constant 0 : index
    %c0_8 = arith.constant 0 : index
    %7 = vector.load %arg15[%c0_7, %c0_8] : memref<18x16xf32, #tpu.memory_space<vmem>>, vector<16x16xf32>
    %c0_9 = arith.constant 0 : index
    %c0_10 = arith.constant 0 : index
    %c0_11 = arith.constant 0 : index
    %8 = vector.load %arg2[%c0_9, %c0_10, %c0_11] : memref<3x16x64xf32, #tpu.memory_space<vmem>>, vector<1x16x64xf32>
    %9 = vector.shape_cast %8 : vector<1x16x64xf32> to vector<16x64xf32>
    %cst_12 = arith.constant dense<0.000000e+00> : vector<16x64xf32>
    %10 = tpu.matmul %7, %9, %cst_12 {dimension_numbers = #tpu.dot_dimension_numbers<[1], [0], [0], [1], [0, 0, 1, 1], [], []>} : vector<16x16xf32>, vector<16x64xf32>, vector<16x64xf32> -> vector<16x64xf32>
    %c1_13 = arith.constant 1 : index
    %c0_14 = arith.constant 0 : index
    %11 = vector.load %arg15[%c1_13, %c0_14] : memref<18x16xf32, #tpu.memory_space<vmem>>, vector<16x16xf32>
    %c1_15 = arith.constant 1 : index
    %c0_16 = arith.constant 0 : index
    %c0_17 = arith.constant 0 : index
    %12 = vector.load %arg2[%c1_15, %c0_16, %c0_17] : memref<3x16x64xf32, #tpu.memory_space<vmem>>, vector<1x16x64xf32>
    %13 = vector.shape_cast %12 : vector<1x16x64xf32> to vector<16x64xf32>
    %cst_18 = arith.constant dense<0.000000e+00> : vector<16x64xf32>
    %14 = tpu.matmul %11, %13, %cst_18 {dimension_numbers = #tpu.dot_dimension_numbers<[1], [0], [0], [1], [0, 0, 1, 1], [], []>} : vector<16x16xf32>, vector<16x64xf32>, vector<16x64xf32> -> vector<16x64xf32>
    %15 = arith.addf %10, %14 : vector<16x64xf32>
    %c2 = arith.constant 2 : index
    %c0_19 = arith.constant 0 : index
    %16 = vector.load %arg15[%c2, %c0_19] : memref<18x16xf32, #tpu.memory_space<vmem>>, vector<16x16xf32>
    %c2_20 = arith.constant 2 : index
    %c0_21 = arith.constant 0 : index
    %c0_22 = arith.constant 0 : index
    %17 = vector.load %arg2[%c2_20, %c0_21, %c0_22] : memref<3x16x64xf32, #tpu.memory_space<vmem>>, vector<1x16x64xf32>
    %18 = vector.shape_cast %17 : vector<1x16x64xf32> to vector<16x64xf32>
    %cst_23 = arith.constant dense<0.000000e+00> : vector<16x64xf32>
    %19 = tpu.matmul %16, %18, %cst_23 {dimension_numbers = #tpu.dot_dimension_numbers<[1], [0], [0], [1], [0, 0, 1, 1], [], []>} : vector<16x16xf32>, vector<16x64xf32>, vector<16x64xf32> -> vector<16x64xf32>
    %20 = arith.addf %15, %19 : vector<16x64xf32>
    %c0_24 = arith.constant 0 : index
    %c0_25 = arith.constant 0 : index
    %21 = vector.load %arg3[%c0_24, %c0_25] : memref<1x64xf32, #tpu.memory_space<vmem>>, vector<1x64xf32>
    %22 = vector.broadcast %21 : vector<1x64xf32> to vector<16x64xf32>
    %23 = arith.addf %20, %22 : vector<16x64xf32>
    %cst_26 = arith.constant 0.000000e+00 : f32
    %24 = vector.broadcast %cst_26 : f32 to vector<16x64xf32>
    %25 = arith.maximumf %23, %24 : vector<16x64xf32>
    %c0_27 = arith.constant 0 : index
    %c0_28 = arith.constant 0 : index
    %c0_29 = arith.constant 0 : index
    %26 = vector.load %arg4[%c0_27, %c0_28, %c0_29] : memref<2x8x16xf32, #tpu.memory_space<vmem>>, vector<1x8x16xf32>
    %27 = vector.shape_cast %26 : vector<1x8x16xf32> to vector<8x16xf32>
    %cst_30 = arith.constant dense<0.000000e+00> : vector<8x64xf32>
    %28 = tpu.matmul %27, %25, %cst_30 {dimension_numbers = #tpu.dot_dimension_numbers<[1], [0], [0], [1], [0, 0, 1, 1], [], []>} : vector<8x16xf32>, vector<16x64xf32>, vector<8x64xf32> -> vector<8x64xf32>
    %c1_31 = arith.constant 1 : index
    %c0_32 = arith.constant 0 : index
    %c0_33 = arith.constant 0 : index
    %29 = vector.load %arg4[%c1_31, %c0_32, %c0_33] : memref<2x8x16xf32, #tpu.memory_space<vmem>>, vector<1x8x16xf32>
    %30 = vector.shape_cast %29 : vector<1x8x16xf32> to vector<8x16xf32>
    %cst_34 = arith.constant dense<0.000000e+00> : vector<8x64xf32>
    %31 = tpu.matmul %30, %25, %cst_34 {dimension_numbers = #tpu.dot_dimension_numbers<[1], [0], [0], [1], [0, 0, 1, 1], [], []>} : vector<8x16xf32>, vector<16x64xf32>, vector<8x64xf32> -> vector<8x64xf32>
    %32 = arith.maximumf %28, %31 : vector<8x64xf32>
    %c0_35 = arith.constant 0 : index
    %c0_36 = arith.constant 0 : index
    %c0_37 = arith.constant 0 : index
    %33 = vector.load %arg5[%c0_35, %c0_36, %c0_37] : memref<2x64x32xf32, #tpu.memory_space<vmem>>, vector<1x64x32xf32>
    %34 = vector.shape_cast %33 : vector<1x64x32xf32> to vector<64x32xf32>
    %cst_38 = arith.constant dense<0.000000e+00> : vector<8x32xf32>
    %35 = tpu.matmul %32, %34, %cst_38 {dimension_numbers = #tpu.dot_dimension_numbers<[1], [0], [0], [1], [0, 0, 1, 1], [], []>} : vector<8x64xf32>, vector<64x32xf32>, vector<8x32xf32> -> vector<8x32xf32>
    %c1_39 = arith.constant 1 : index
    %c0_40 = arith.constant 0 : index
    %c0_41 = arith.constant 0 : index
    %36 = vector.load %arg5[%c1_39, %c0_40, %c0_41] : memref<2x64x32xf32, #tpu.memory_space<vmem>>, vector<1x64x32xf32>
    %37 = vector.shape_cast %36 : vector<1x64x32xf32> to vector<64x32xf32>
    %cst_42 = arith.constant dense<0.000000e+00> : vector<8x32xf32>
    %38 = tpu.matmul %32, %37, %cst_42 {dimension_numbers = #tpu.dot_dimension_numbers<[1], [0], [0], [1], [0, 0, 1, 1], [], []>} : vector<8x64xf32>, vector<64x32xf32>, vector<8x32xf32> -> vector<8x32xf32>
    %39 = arith.maximumf %35, %38 : vector<8x32xf32>
    %cst_43 = arith.constant 0.000000e+00 : f32
    %40 = vector.broadcast %cst_43 : f32 to vector<1x32xf32>
    %c0_44 = arith.constant 0 : index
    %c0_45 = arith.constant 0 : index
    %41 = vector.load %arg16[%c0_44, %c0_45] : memref<10x32xf32, #tpu.memory_space<vmem>>, vector<1x32xf32>
    tpu.vector_store %arg16[%c0_44, %c0_45], %40 {strides = array<i32>} : memref<10x32xf32, #tpu.memory_space<vmem>>, vector<1x32xf32>,
    %cst_46 = arith.constant 0.000000e+00 : f32
    %42 = vector.broadcast %cst_46 : f32 to vector<1x32xf32>
    %c9 = arith.constant 9 : index
    %c0_47 = arith.constant 0 : index
    %43 = vector.load %arg16[%c9, %c0_47] : memref<10x32xf32, #tpu.memory_space<vmem>>, vector<1x32xf32>
    tpu.vector_store %arg16[%c9, %c0_47], %42 {strides = array<i32>} : memref<10x32xf32, #tpu.memory_space<vmem>>, vector<1x32xf32>,
    %c1_48 = arith.constant 1 : index
    %c0_49 = arith.constant 0 : index
    %44 = vector.load %arg16[%c1_48, %c0_49] : memref<10x32xf32, #tpu.memory_space<vmem>>, vector<8x32xf32>
    tpu.vector_store %arg16[%c1_48, %c0_49], %39 {strides = array<i32>} : memref<10x32xf32, #tpu.memory_space<vmem>>, vector<8x32xf32>,
    %c0_50 = arith.constant 0 : index
    %c0_51 = arith.constant 0 : index
    %45 = vector.load %arg16[%c0_50, %c0_51] : memref<10x32xf32, #tpu.memory_space<vmem>>, vector<8x32xf32>
    %c0_52 = arith.constant 0 : index
    %c0_53 = arith.constant 0 : index
    %c0_54 = arith.constant 0 : index
    %46 = vector.load %arg6[%c0_52, %c0_53, %c0_54] : memref<3x32x64xf32, #tpu.memory_space<vmem>>, vector<1x32x64xf32>
    %47 = vector.shape_cast %46 : vector<1x32x64xf32> to vector<32x64xf32>
    %cst_55 = arith.constant dense<0.000000e+00> : vector<8x64xf32>
    %48 = tpu.matmul %45, %47, %cst_55 {dimension_numbers = #tpu.dot_dimension_numbers<[1], [0], [0], [1], [0, 0, 1, 1], [], []>} : vector<8x32xf32>, vector<32x64xf32>, vector<8x64xf32> -> vector<8x64xf32>
    %c1_56 = arith.constant 1 : index
    %c0_57 = arith.constant 0 : index
    %49 = vector.load %arg16[%c1_56, %c0_57] : memref<10x32xf32, #tpu.memory_space<vmem>>, vector<8x32xf32>
    %c1_58 = arith.constant 1 : index
    %c0_59 = arith.constant 0 : index
    %c0_60 = arith.constant 0 : index
    %50 = vector.load %arg6[%c1_58, %c0_59, %c0_60] : memref<3x32x64xf32, #tpu.memory_space<vmem>>, vector<1x32x64xf32>
    %51 = vector.shape_cast %50 : vector<1x32x64xf32> to vector<32x64xf32>
    %cst_61 = arith.constant dense<0.000000e+00> : vector<8x64xf32>
    %52 = tpu.matmul %49, %51, %cst_61 {dimension_numbers = #tpu.dot_dimension_numbers<[1], [0], [0], [1], [0, 0, 1, 1], [], []>} : vector<8x32xf32>, vector<32x64xf32>, vector<8x64xf32> -> vector<8x64xf32>
    %53 = arith.addf %48, %52 : vector<8x64xf32>
    %c2_62 = arith.constant 2 : index
    %c0_63 = arith.constant 0 : index
    %54 = vector.load %arg16[%c2_62, %c0_63] : memref<10x32xf32, #tpu.memory_space<vmem>>, vector<8x32xf32>
    %c2_64 = arith.constant 2 : index
    %c0_65 = arith.constant 0 : index
    %c0_66 = arith.constant 0 : index
    %55 = vector.load %arg6[%c2_64, %c0_65, %c0_66] : memref<3x32x64xf32, #tpu.memory_space<vmem>>, vector<1x32x64xf32>
    %56 = vector.shape_cast %55 : vector<1x32x64xf32> to vector<32x64xf32>
    %cst_67 = arith.constant dense<0.000000e+00> : vector<8x64xf32>
    %57 = tpu.matmul %54, %56, %cst_67 {dimension_numbers = #tpu.dot_dimension_numbers<[1], [0], [0], [1], [0, 0, 1, 1], [], []>} : vector<8x32xf32>, vector<32x64xf32>, vector<8x64xf32> -> vector<8x64xf32>
    %58 = arith.addf %53, %57 : vector<8x64xf32>
    %c0_68 = arith.constant 0 : index
    %c0_69 = arith.constant 0 : index
    %59 = vector.load %arg7[%c0_68, %c0_69] : memref<1x64xf32, #tpu.memory_space<vmem>>, vector<1x64xf32>
    %60 = vector.broadcast %59 : vector<1x64xf32> to vector<8x64xf32>
    %61 = arith.addf %58, %60 : vector<8x64xf32>
    %cst_70 = arith.constant 0.000000e+00 : f32
    %62 = vector.broadcast %cst_70 : f32 to vector<8x64xf32>
    %63 = arith.maximumf %61, %62 : vector<8x64xf32>
    %c0_71 = arith.constant 0 : index
    %c0_72 = arith.constant 0 : index
    %c0_73 = arith.constant 0 : index
    %64 = vector.load %arg8[%c0_71, %c0_72, %c0_73] : memref<2x4x8xf32, #tpu.memory_space<vmem>>, vector<1x4x8xf32>
    %65 = vector.shape_cast %64 : vector<1x4x8xf32> to vector<4x8xf32>
    %cst_74 = arith.constant dense<0.000000e+00> : vector<4x64xf32>
    %66 = tpu.matmul %65, %63, %cst_74 {dimension_numbers = #tpu.dot_dimension_numbers<[1], [0], [0], [1], [0, 0, 1, 1], [], []>} : vector<4x8xf32>, vector<8x64xf32>, vector<4x64xf32> -> vector<4x64xf32>
    %c1_75 = arith.constant 1 : index
    %c0_76 = arith.constant 0 : index
    %c0_77 = arith.constant 0 : index
    %67 = vector.load %arg8[%c1_75, %c0_76, %c0_77] : memref<2x4x8xf32, #tpu.memory_space<vmem>>, vector<1x4x8xf32>
    %68 = vector.shape_cast %67 : vector<1x4x8xf32> to vector<4x8xf32>
    %cst_78 = arith.constant dense<0.000000e+00> : vector<4x64xf32>
    %69 = tpu.matmul %68, %63, %cst_78 {dimension_numbers = #tpu.dot_dimension_numbers<[1], [0], [0], [1], [0, 0, 1, 1], [], []>} : vector<4x8xf32>, vector<8x64xf32>, vector<4x64xf32> -> vector<4x64xf32>
    %70 = arith.maximumf %66, %69 : vector<4x64xf32>
    %c0_79 = arith.constant 0 : index
    %c0_80 = arith.constant 0 : index
    %c0_81 = arith.constant 0 : index
    %71 = vector.load %arg9[%c0_79, %c0_80, %c0_81] : memref<2x64x32xf32, #tpu.memory_space<vmem>>, vector<1x64x32xf32>
    %72 = vector.shape_cast %71 : vector<1x64x32xf32> to vector<64x32xf32>
    %cst_82 = arith.constant dense<0.000000e+00> : vector<4x32xf32>
    %73 = tpu.matmul %70, %72, %cst_82 {dimension_numbers = #tpu.dot_dimension_numbers<[1], [0], [0], [1], [0, 0, 1, 1], [], []>} : vector<4x64xf32>, vector<64x32xf32>, vector<4x32xf32> -> vector<4x32xf32>
    %c1_83 = arith.constant 1 : index
    %c0_84 = arith.constant 0 : index
    %c0_85 = arith.constant 0 : index
    %74 = vector.load %arg9[%c1_83, %c0_84, %c0_85] : memref<2x64x32xf32, #tpu.memory_space<vmem>>, vector<1x64x32xf32>
    %75 = vector.shape_cast %74 : vector<1x64x32xf32> to vector<64x32xf32>
    %cst_86 = arith.constant dense<0.000000e+00> : vector<4x32xf32>
    %76 = tpu.matmul %70, %75, %cst_86 {dimension_numbers = #tpu.dot_dimension_numbers<[1], [0], [0], [1], [0, 0, 1, 1], [], []>} : vector<4x64xf32>, vector<64x32xf32>, vector<4x32xf32> -> vector<4x32xf32>
    %77 = arith.maximumf %73, %76 : vector<4x32xf32>
    %78 = vector.extract_strided_slice %77 {offsets = [0, 0], sizes = [1, 32], strides = [1, 1]} : vector<4x32xf32> to vector<1x32xf32>
    %c0_87 = arith.constant 0 : index
    %c0_88 = arith.constant 0 : index
    %c0_89 = arith.constant 0 : index
    %79 = vector.load %arg10[%c0_87, %c0_88, %c0_89] : memref<4x32x32xf32, #tpu.memory_space<vmem>>, vector<1x32x32xf32>
    %80 = vector.shape_cast %79 : vector<1x32x32xf32> to vector<32x32xf32>
    %cst_90 = arith.constant dense<0.000000e+00> : vector<1x32xf32>
    %81 = tpu.matmul %78, %80, %cst_90 {dimension_numbers = #tpu.dot_dimension_numbers<[1], [0], [0], [1], [0, 0, 1, 1], [], []>} : vector<1x32xf32>, vector<32x32xf32>, vector<1x32xf32> -> vector<1x32xf32>
    %82 = vector.extract_strided_slice %77 {offsets = [1, 0], sizes = [1, 32], strides = [1, 1]} : vector<4x32xf32> to vector<1x32xf32>
    %c1_91 = arith.constant 1 : index
    %c0_92 = arith.constant 0 : index
    %c0_93 = arith.constant 0 : index
    %83 = vector.load %arg10[%c1_91, %c0_92, %c0_93] : memref<4x32x32xf32, #tpu.memory_space<vmem>>, vector<1x32x32xf32>
    %84 = vector.shape_cast %83 : vector<1x32x32xf32> to vector<32x32xf32>
    %cst_94 = arith.constant dense<0.000000e+00> : vector<1x32xf32>
    %85 = tpu.matmul %82, %84, %cst_94 {dimension_numbers = #tpu.dot_dimension_numbers<[1], [0], [0], [1], [0, 0, 1, 1], [], []>} : vector<1x32xf32>, vector<32x32xf32>, vector<1x32xf32> -> vector<1x32xf32>
    %86 = arith.addf %81, %85 : vector<1x32xf32>
    %87 = vector.extract_strided_slice %77 {offsets = [2, 0], sizes = [1, 32], strides = [1, 1]} : vector<4x32xf32> to vector<1x32xf32>
    %c2_95 = arith.constant 2 : index
    %c0_96 = arith.constant 0 : index
    %c0_97 = arith.constant 0 : index
    %88 = vector.load %arg10[%c2_95, %c0_96, %c0_97] : memref<4x32x32xf32, #tpu.memory_space<vmem>>, vector<1x32x32xf32>
    %89 = vector.shape_cast %88 : vector<1x32x32xf32> to vector<32x32xf32>
    %cst_98 = arith.constant dense<0.000000e+00> : vector<1x32xf32>
    %90 = tpu.matmul %87, %89, %cst_98 {dimension_numbers = #tpu.dot_dimension_numbers<[1], [0], [0], [1], [0, 0, 1, 1], [], []>} : vector<1x32xf32>, vector<32x32xf32>, vector<1x32xf32> -> vector<1x32xf32>
    %91 = arith.addf %86, %90 : vector<1x32xf32>
    %92 = vector.extract_strided_slice %77 {offsets = [3, 0], sizes = [1, 32], strides = [1, 1]} : vector<4x32xf32> to vector<1x32xf32>
    %c3 = arith.constant 3 : index
    %c0_99 = arith.constant 0 : index
    %c0_100 = arith.constant 0 : index
    %93 = vector.load %arg10[%c3, %c0_99, %c0_100] : memref<4x32x32xf32, #tpu.memory_space<vmem>>, vector<1x32x32xf32>
    %94 = vector.shape_cast %93 : vector<1x32x32xf32> to vector<32x32xf32>
    %cst_101 = arith.constant dense<0.000000e+00> : vector<1x32xf32>
    %95 = tpu.matmul %92, %94, %cst_101 {dimension_numbers = #tpu.dot_dimension_numbers<[1], [0], [0], [1], [0, 0, 1, 1], [], []>} : vector<1x32xf32>, vector<32x32xf32>, vector<1x32xf32> -> vector<1x32xf32>
    %96 = arith.addf %91, %95 : vector<1x32xf32>
    %c0_102 = arith.constant 0 : index
    %c0_103 = arith.constant 0 : index
    %97 = vector.load %arg11[%c0_102, %c0_103] : memref<1x32xf32, #tpu.memory_space<vmem>>, vector<1x32xf32>
    %98 = arith.addf %96, %97 : vector<1x32xf32>
    %cst_104 = arith.constant 0.000000e+00 : f32
    %99 = vector.broadcast %cst_104 : f32 to vector<1x32xf32>
    %100 = arith.maximumf %98, %99 : vector<1x32xf32>
    %c0_105 = arith.constant 0 : index
    %c0_106 = arith.constant 0 : index
    %101 = vector.load %arg12[%c0_105, %c0_106] : memref<32x10xf32, #tpu.memory_space<vmem>>, vector<32x10xf32>
    %cst_107 = arith.constant dense<0.000000e+00> : vector<1x10xf32>
    %102 = tpu.matmul %100, %101, %cst_107 {dimension_numbers = #tpu.dot_dimension_numbers<[1], [0], [0], [1], [0, 0, 1, 1], [], []>} : vector<1x32xf32>, vector<32x10xf32>, vector<1x10xf32> -> vector<1x10xf32>
    %c0_108 = arith.constant 0 : index
    %c0_109 = arith.constant 0 : index
    %103 = vector.load %arg13[%c0_108, %c0_109] : memref<1x10xf32, #tpu.memory_space<vmem>>, vector<1x10xf32>
    %104 = arith.addf %102, %103 : vector<1x10xf32>
    %c0_110 = arith.constant 0 : index
    %c0_111 = arith.constant 0 : index
    %c0_112 = arith.constant 0 : index
    %105 = vector.load %arg14[%c0_110, %c0_111, %c0_112] : memref<1x1x10xf32, #tpu.memory_space<vmem>>, vector<1x1x10xf32>
    %106 = vector.shape_cast %105 : vector<1x1x10xf32> to vector<1x10xf32>
    %107 = vector.shape_cast %104 : vector<1x10xf32> to vector<1x1x10xf32>
    tpu.vector_store %arg14[%c0_110, %c0_111, %c0_112], %107 {strides = array<i32>} : memref<1x1x10xf32, #tpu.memory_space<vmem>>, vector<1x1x10xf32>,
    return
  }
  func.func @transform_0(%arg0: i32) -> (i32, i32, i32) {
    %c0_i32 = arith.constant 0 : i32
    %c0_i32_0 = arith.constant 0 : i32
    %c0_i32_1 = arith.constant 0 : i32
    return %arg0, %c0_i32, %c0_i32_0 : i32, i32, i32
  }
  func.func @transform_1(%arg0: i32) -> (i32, i32, i32) {
    %c0_i32 = arith.constant 0 : i32
    %c0_i32_0 = arith.constant 0 : i32
    %c0_i32_1 = arith.constant 0 : i32
    %c0_i32_2 = arith.constant 0 : i32
    return %c0_i32, %c0_i32_0, %c0_i32_1 : i32, i32, i32
  }
  func.func @transform_2(%arg0: i32) -> (i32, i32) {
    %c0_i32 = arith.constant 0 : i32
    %c0_i32_0 = arith.constant 0 : i32
    %c0_i32_1 = arith.constant 0 : i32
    return %c0_i32, %c0_i32_0 : i32, i32
  }
  func.func @transform_3(%arg0: i32) -> (i32, i32, i32) {
    %c0_i32 = arith.constant 0 : i32
    %c0_i32_0 = arith.constant 0 : i32
    %c0_i32_1 = arith.constant 0 : i32
    %c0_i32_2 = arith.constant 0 : i32
    return %c0_i32, %c0_i32_0, %c0_i32_1 : i32, i32, i32
  }
  func.func @transform_4(%arg0: i32) -> (i32, i32, i32) {
    %c0_i32 = arith.constant 0 : i32
    %c0_i32_0 = arith.constant 0 : i32
    %c0_i32_1 = arith.constant 0 : i32
    %c0_i32_2 = arith.constant 0 : i32
    return %c0_i32, %c0_i32_0, %c0_i32_1 : i32, i32, i32
  }
  func.func @transform_5(%arg0: i32) -> (i32, i32, i32) {
    %c0_i32 = arith.constant 0 : i32
    %c0_i32_0 = arith.constant 0 : i32
    %c0_i32_1 = arith.constant 0 : i32
    %c0_i32_2 = arith.constant 0 : i32
    return %c0_i32, %c0_i32_0, %c0_i32_1 : i32, i32, i32
  }
  func.func @transform_6(%arg0: i32) -> (i32, i32) {
    %c0_i32 = arith.constant 0 : i32
    %c0_i32_0 = arith.constant 0 : i32
    %c0_i32_1 = arith.constant 0 : i32
    return %c0_i32, %c0_i32_0 : i32, i32
  }
  func.func @transform_7(%arg0: i32) -> (i32, i32, i32) {
    %c0_i32 = arith.constant 0 : i32
    %c0_i32_0 = arith.constant 0 : i32
    %c0_i32_1 = arith.constant 0 : i32
    %c0_i32_2 = arith.constant 0 : i32
    return %c0_i32, %c0_i32_0, %c0_i32_1 : i32, i32, i32
  }
  func.func @transform_8(%arg0: i32) -> (i32, i32, i32) {
    %c0_i32 = arith.constant 0 : i32
    %c0_i32_0 = arith.constant 0 : i32
    %c0_i32_1 = arith.constant 0 : i32
    %c0_i32_2 = arith.constant 0 : i32
    return %c0_i32, %c0_i32_0, %c0_i32_1 : i32, i32, i32
  }
  func.func @transform_9(%arg0: i32) -> (i32, i32, i32) {
    %c0_i32 = arith.constant 0 : i32
    %c0_i32_0 = arith.constant 0 : i32
    %c0_i32_1 = arith.constant 0 : i32
    %c0_i32_2 = arith.constant 0 : i32
    return %c0_i32, %c0_i32_0, %c0_i32_1 : i32, i32, i32
  }
  func.func @transform_10(%arg0: i32) -> (i32, i32) {
    %c0_i32 = arith.constant 0 : i32
    %c0_i32_0 = arith.constant 0 : i32
    %c0_i32_1 = arith.constant 0 : i32
    return %c0_i32, %c0_i32_0 : i32, i32
  }
  func.func @transform_11(%arg0: i32) -> (i32, i32) {
    %c0_i32 = arith.constant 0 : i32
    %c0_i32_0 = arith.constant 0 : i32
    %c0_i32_1 = arith.constant 0 : i32
    return %c0_i32, %c0_i32_0 : i32, i32
  }
  func.func @transform_12(%arg0: i32) -> (i32, i32) {
    %c0_i32 = arith.constant 0 : i32
    %c0_i32_0 = arith.constant 0 : i32
    %c0_i32_1 = arith.constant 0 : i32
    return %c0_i32, %c0_i32_0 : i32, i32
  }
  func.func @transform_13(%arg0: i32) -> (i32, i32, i32) {
    %c0_i32 = arith.constant 0 : i32
    %c0_i32_0 = arith.constant 0 : i32
    %c0_i32_1 = arith.constant 0 : i32
    return %arg0, %c0_i32, %c0_i32_0 : i32, i32, i32
  }
}

</mosaic_0001>

<bundles_post_ra>
// kernel: cnn_forward.1
= control target key start
LH: loop header
LB: loop body
LE: loop exit
PB: predicated region body
PF: predicated region fallthrough
CT: control target
= control target key end

     0   :  { %s1689_s0 = inlined_call_operand.vmem [shape: f32[2,16,16], index: 0, kind: input, shape index: {}]   ;;  %s1690_s1 = inlined_call_operand.vmem [shape: f32[3,16,64], index: 1, kind: input, shape index: {}]   ;;  %s1691_s2 = inlined_call_operand.vmem [shape: f32[1,64], index: 2, kind: input, shape index: {}]   ;;  %s1692_s3 = inlined_call_operand.vmem [shape: f32[2,8,16], index: 3, kind: input, shape index: {}]   ;;  %s1693_s4 = inlined_call_operand.vmem [shape: f32[2,64,32], index: 4, kind: input, shape index: {}]   ;;  %s1694_s5 = inlined_call_operand.vmem [shape: f32[3,32,64], index: 5, kind: input, shape index: {}]   ;;  %s1695_s6 = inlined_call_operand.vmem [shape: f32[1,64], index: 6, kind: input, shape index: {}]   ;;  %s1696_s7 = inlined_call_operand.vmem [shape: f32[2,4,8], index: 7, kind: input, shape index: {}]   ;;  %s1697_s8 = inlined_call_operand.vmem [shape: f32[2,64,32], index: 8, kind: input, shape index: {}]   ;;  %s1698_s9 = inlined_call_operand.vmem [shape: f32[4,32,32], index: 9, kind: input, shape index: {}]   ;;  %s1699_s10 = inlined_call_operand.vmem [shape: f32[1,32], index: 10, kind: input, shape index: {}]   ;;  %s1700_s11 = inlined_call_operand.vmem [shape: f32[32,10], index: 11, kind: input, shape index: {}]   ;;  %s1701_s12 = inlined_call_operand.vmem [shape: f32[1,10], index: 12, kind: input, shape index: {}]   ;;  %s1702_s13 = inlined_call_operand.hbm [shape: f32[2,1,10], index: 13, kind: output, shape index: {}]  }
   0x1   :  { %1704 = sst [smem:[#allocation9_spill]] %s1689_s0 }
   0x2   :  { %1705 = sst [smem:[#allocation10_spill]] %s1690_s1 }
   0x3   :  { %18 = vsyncpa [#allocation5], 0 }
   0x4   :  { %20 = vsyncpa [#allocation5 + $0x1], 0  ;;  %s1343_s25 = smov 0   ;;  %s1345_s26 = smov 0  }
   0x5   :  { %s1347_s27 = smov 0   ;;  %s1349_s28 = smov 0  }
   0x6 LB: > { %1706 = sst [smem:[#allocation7_spill]] %s1266_s27  ;;  %s1364_s29 = sadd.s32 4294967295, %s1270_s28   ;;  %s1270_s28 = sphi %s1349_s28, %s1716_s28   ;;  %s1266_s27 = sphi %s1347_s27, %s1713_s27   ;;  %s1262_s26 = sphi %s1345_s26, %s1715_s26   ;;  %s1258_s25 = sphi %s1343_s25, %s1714_s25  }
   0x7   : > { %s1093_s30 = sadd.s32 4294967294, %s1270_s28   ;;  %s1368_s14 = sadd.s32 1, %s1270_s28  }
   0x8   : > { %s311_s15 = sadd.s32 1, %s1266_s27  ;;  %s308_s16 = ssub.s32 %s1270_s28, %s1368_s14 }
   0x9   : > { %p321_p0 = scmp.ne.s32.totalorder %s1266_s27, %s1262_s26  ;;  %p309_p1 = scmp.eq.s32.totalorder %s308_s16, 0 }
   0xa   : > { %p322_p2 = scmp.eq.s32.totalorder %s1364_s29, 1  ;;  %p327_p3 = scmp.ne.s32.totalorder %s1262_s26, %s1258_s25 }
   0xb   : > { %p328_p4 = scmp.eq.s32.totalorder %s1093_s30, 1  ;;  %p1096_p7 = scmp.ge.s32.totalorder %s1270_s28, 1 }
   0xc   : > { %s1379_s17 = scalar_select %p309_p1, %s1266_s27, %s311_s15  }
   0xd   : > { %p1381_p5 = por %p322_p2, %p321_p0  ;;  %p1385_p6 = por %p328_p4, %p327_p3 }
   0xe   : > { %1707 = sst [smem:[#allocation8_spill]] %s1379_s17  ;;  %p390_p8 = scmp.lt.s32.totalorder %s1270_s28, 3 }
  0x10   : > { %p391_p9 = pnand %p1096_p7, %p390_p8 }
  0x11   : > { %s1710_s1 = sld [smem:[#allocation10_spill]] (!%p391_p9)  ;;  %p433_p10 = scmp.lt.s32.totalorder (!%p391_p9), %s1364_s29, 1 }
  0x12   : > { %394 = sbr.rel (%p391_p9) target bundleno = 1158 (0x486), region = 72  ;;  %s1711_s0 = sld [smem:[#allocation9_spill]] (!%p391_p9) }
  0x13   : > { %s431_s16 = sand.u32 (!%p391_p9), 1, %s1262_s26   ;;  %s1228_s21 = scalar_lea.hbm (!%p391_p9), %s1702_s13, 2 }
  0x14   : > { %s432_s30 = scalar_lea.vmem (!%p391_p9), [#allocation4], %s431_s16  ;;  %s1026_s27 = scalar_lea.sflag (!%p391_p9), [#allocation5], %s431_s16 }
  0x17   : > { %v1106_v0 = vld [vmem:[%s1710_s1 + $0x28] sm:$0xff]  ;;  %v1105_v1 = vld [vmem:[%s1710_s1 + $0x20] sm:$0xff]  ;;  %v1100_v2 = vld [vmem:[%s1710_s1 + $0x18] sm:$0xff]  ;;  %vm440_vm0 = vcmask 122880   ;;  %s434_s22 = scalar_select %p433_p10, %s1364_s29, 1  ;;  %v1272_v6 = vmov 0.0  }
  0x18   : > { %538 = vmatpush.msra.mxu2 %v1106_v0  ;;  %475 = vmatpush.msra.mxu0 %v1100_v2  ;;  %v449_v3 = vld [vmem:[%s1710_s1 + $0x8] sm:$0xff]  ;;  %v1099_v4 = vld [vmem:[%s1710_s1 + $0x10] sm:$0xff]  ;;  %v448_v5 = vld [vmem:[%s1710_s1] sm:$0xff]  ;;  %441 = vst.msk [vmem:[#allocation2] sm:$0x1] %vm440_vm0, %v1272_v6  ;;  %vm443_vm1 = vcmask 130048  }
  0x19   : > { %504 = vmatpush.msra.mxu1 %v449_v3  ;;  %442 = vst.msk [vmem:[#allocation2 + $0x11] sm:$0x1] %vm440_vm0, %v1272_v6  ;;  %s1165_s23 = sshll.u32 %s434_s22, 4  ;;  %v614_v17 = vld [vmem:[%s1693_s4 + $0x38] sm:$0xff]  ;;  %v613_v19 = vld [vmem:[%s1693_s4 + $0x30] sm:$0xff]  ;;  %v557_v34 = vld [vmem:[%s1692_s3] sm:$0xff]  ;;  %s1034_s22 = scalar_lea.hbm %s1702_s13, %s1364_s29 }
  0x1a   : > { %539 = vmatpush.msra.mxu2 %v1105_v1  ;;  %476 = vmatpush.msra.mxu0 %v1099_v4  ;;  %s437_s15 = scalar_lea.vmem %s1711_s0, %s1165_s23  ;;  %v1120_v18 = vld [vmem:[%s1693_s4 + $0x78] sm:$0xff]  ;;  %v1119_v20 = vld [vmem:[%s1693_s4 + $0x70] sm:$0xff]  ;;  %v1206_v27 = vld [vmem:[%s1691_s2] ss:$0 sm:$0xff]  ;;  %vm615_vm2 = vcmask 523264   ;;  %vm669_vm3 = vcmask 253952  }
  0x1b   : > { %505 = vmatpush.msra.mxu1 %v448_v5  ;;  %v438_v7 = vld [vmem:[%s437_s15] sm:$0xff]  ;;  %v439_v8 = vld [vmem:[%s437_s15 + $0x8] sm:$0xff]  ;;  %v610_v40 = vld [vmem:[%s1693_s4 + $0x18] sm:$0xff]  ;;  %670 = vst.msk [vmem:[#allocation3] sm:$0x1] %vm669_vm3, %v1272_v6  ;;  %vm672_vm4 = vcmask 261120  }
  0x1c   : > { %444 = vst.msk [vmem:[#allocation2 + $0x1] sm:$0xff] %vm443_vm1, %v438_v7  ;;  %627 = vmatpush.msrb.mxu0 %v614_v17  ;;  %v1110_v35 = vld [vmem:[%s1692_s3 + $0x8] sm:$0xff]  ;;  %v611_v38 = vld [vmem:[%s1693_s4 + $0x20] sm:$0xff]  ;;  %v1116_v41 = vld [vmem:[%s1693_s4 + $0x58] sm:$0xff]  ;;  %vm768_vm5 = vcmask 64512   ;;  %s1036_s15 = sshll.u32 %s432_s30, 4  ;;  %s1037_s15 = int_to_ptr.vmem [resolvable:$true] %s1036_s15 }
  0x1d   : > { %445 = vst.msk [vmem:[#allocation2 + $0x9] sm:$0xff] %vm443_vm1, %v439_v8  ;;  %656 = vmatpush.msrb.mxu1 %v1120_v18  ;;  %v612_v36 = vld [vmem:[%s1693_s4 + $0x28] sm:$0xff]  ;;  %v1117_v39 = vld [vmem:[%s1693_s4 + $0x60] sm:$0xff]  ;;  %v609_v42 = vld [vmem:[%s1693_s4 + $0x10] sm:$0xff]  ;;  %s1038_s0 = sshll.u32 %s1034_s22, 4  ;;  %vm1023_vm6 = vcmask 73728   ;;  %s1039_s0 = int_to_ptr.hbm [resolvable:$true] %s1038_s0 }
  0x1e   : > { %628 = vmatpush.msrb.mxu0 %v613_v19  ;;  %v1118_v37 = vld [vmem:[%s1693_s4 + $0x68] sm:$0xff]  ;;  %v1115_v43 = vld [vmem:[%s1693_s4 + $0x50] sm:$0xff]  ;;  %v607_v46 = vld [vmem:[%s1693_s4] sm:$0xff]  ;;  %671 = vst.msk [vmem:[#allocation3 + $0x9] sm:$0x1] %vm669_vm3, %v1272_v6  ;;  %s1222_s17 = sshra.s32 %s1039_s0, 4  ;;  %s1223_s17 = int_to_ptr.hbm [resolvable:$true] %s1222_s17 }
  0x1f   : > { %657 = vmatpush.msrb.mxu1 %v1119_v20  ;;  %v608_v44 = vld [vmem:[%s1693_s4 + $0x8] sm:$0xff]  ;;  %v1113_v47 = vld [vmem:[%s1693_s4 + $0x40] sm:$0xff]  ;;  %v1125_v51 = vld [vmem:[%s1694_s5 + $0x38] sm:$0xff]  ;;  %s1224_s1 = scalar_lea.hbm %s1223_s17, 1  ;;  %p1229_p0 = scmp.lt.s32.totalorder %s1223_s17, %s1702_s13 }
  0x20   : > { %629 = vmatpush.msrb.mxu0 %v612_v36  ;;  %v1114_v45 = vld [vmem:[%s1693_s4 + $0x48] sm:$0xff]  ;;  %v678_v52 = vld [vmem:[%s1694_s5 + $0x18] sm:$0xff]  ;;  %700 = vmatpush.msrb.mxu2 %v1125_v51  ;;  %v1124_v54 = vld [vmem:[%s1694_s5 + $0x30] sm:$0xff]  ;;  %p1225_p11 = scmp.ne.s32.totalorder %s1223_s17, %s1224_s1  ;;  %p1230_p1 = scmp.lt.s32.totalorder %s1228_s21, %s1224_s1 }
  0x21   : > { %658 = vmatpush.msrb.mxu1 %v1118_v37  ;;  %v1131_v53 = vld [vmem:[%s1694_s5 + $0x58] sm:$0xff]  ;;  %v677_v55 = vld [vmem:[%s1694_s5 + $0x10] sm:$0xff]  ;;  %v1123_v57 = vld [vmem:[%s1694_s5 + $0x28] sm:$0xff] }
  0x22   : > { %630 = vmatpush.msrb.mxu0 %v611_v38  ;;  %v1130_v56 = vld [vmem:[%s1694_s5 + $0x50] sm:$0xff]  ;;  %v676_v58 = vld [vmem:[%s1694_s5 + $0x8] sm:$0xff]  ;;  %701 = vmatpush.msrb.mxu2 %v1124_v54  ;;  %v1122_v60 = vld [vmem:[%s1694_s5 + $0x20] sm:$0xff]  ;;  %p1226_p12 = pnand %p1225_p11, %p1381_p5  ;;  %p1231_p2 = por %p1230_p1, %p1229_p0 }
  0x23   : > { %v450_v9 = vld [vmem:[#allocation2 + $0x1] sm:$0xff]  ;;  %659 = vmatpush.msrb.mxu1 %v1117_v39  ;;  %v825_v5 = vld [vmem:[%s1697_s8 + $0x38] sm:$0xff]  ;;  %v824_v6 = vld [vmem:[%s1697_s8 + $0x30] sm:$0xff] }
  0x24   : > { %v446_v10 = vld [vmem:[#allocation2] sm:$0xff]  ;;  %1101 = vmatmul.msk.f32.vlgmr.msra.gmra.mxu0 %vm443_vm1, %v450_v9  ;;  %v451_v12 = vld [vmem:[#allocation2 + $0x9] sm:$0xff]  ;;  %702 = vmatpush.msrb.mxu2 %v1123_v57  ;;  %v1144_v7 = vld [vmem:[%s1697_s8 + $0x78] sm:$0xff]  ;;  %p1227_p13 = pneg %p1226_p12 }
  0x25   : > { %v513_v11 = vld [vmem:[#allocation2 + $0x2] sm:$0xff]  ;;  %1103 = vmatmul.msk.f32.vlgmr.msra.gmra.mxu1 %vm443_vm1, %v446_v10  ;;  %v514_v14 = vld [vmem:[#allocation2 + $0xa] sm:$0xff]  ;;  %631 = vmatpush.msrb.mxu0 %v610_v40  ;;  %v1207_v17 = vld [vmem:[%s1695_s6] ss:$0 sm:$0xff] }
  0x26   : > { %1107 = vmatmul.msk.f32.vlgmr.msra.gmra.mxu2 %vm443_vm1, %v513_v11  ;;  %v447_v13 = vld [vmem:[#allocation2 + $0x8] sm:$0xff]  ;;  %660 = vmatpush.msrb.mxu1 %v1116_v41  ;;  %v675_v61 = vld [vmem:[%s1694_s5] sm:$0xff]  ;;  %v1143_v9 = vld [vmem:[%s1697_s8 + $0x70] sm:$0xff]  ;;  %p1232_p3 = pnand %p1231_p2, %p1227_p13 }
  0x27   : > { %632 = vmatpush.msrb.mxu0 %v609_v42  ;;  %v1129_v59 = vld [vmem:[%s1694_s5 + $0x48] sm:$0xff]  ;;  %v1128_v62 = vld [vmem:[%s1694_s5 + $0x40] sm:$0xff]  ;;  %703 = vmatpush.msrb.mxu2 %v1122_v60  ;;  %v1148_v37 = vld [vmem:[%s1698_s9 + $0x30] sm:$0xff] }
  0x28   : > { %661 = vmatpush.msrb.mxu1 %v1115_v43  ;;  %v823_v8 = vld [vmem:[%s1697_s8 + $0x28] sm:$0xff]  ;;  %v822_v11 = vld [vmem:[%s1697_s8 + $0x20] sm:$0xff]  ;;  %v1160_v42 = vld [vmem:[%s1698_s9 + $0x78] sm:$0xff] }
  0x29   : > { %633 = vmatpush.msrb.mxu0 %v608_v44  ;;  %v1142_v10 = vld [vmem:[%s1697_s8 + $0x68] sm:$0xff]  ;;  %v879_v40 = vld [vmem:[%s1698_s9] sm:$0xff]  ;;  %v1155_v43 = vld [vmem:[%s1698_s9 + $0x58] sm:$0xff] }
  0x2a   : > { %662 = vmatpush.msrb.mxu1 %v1114_v45  ;;  %v880_v38 = vld [vmem:[%s1698_s9 + $0x8] sm:$0xff]  ;;  %v1146_v41 = vld [vmem:[%s1698_s9 + $0x20] sm:$0xff]  ;;  %v1159_v44 = vld [vmem:[%s1698_s9 + $0x70] sm:$0xff] }
  0x2b   : > { %634 = vmatpush.msrb.mxu0 %v607_v46  ;;  %v1147_v39 = vld [vmem:[%s1698_s9 + $0x28] sm:$0xff]  ;;  %v1154_v45 = vld [vmem:[%s1698_s9 + $0x50] sm:$0xff] }
  0x2c   : > { %1102 = vmatmul.msk.f32.gmra.mxu0 %vm443_vm1, %v451_v12  ;;  %663 = vmatpush.msrb.mxu1 %v1113_v47  ;;  %v821_v12 = vld [vmem:[%s1697_s8 + $0x18] sm:$0xff]  ;;  %v1158_v46 = vld [vmem:[%s1698_s9 + $0x68] sm:$0xff]  ;;  %v997_v57 = vld [vmem:[%s1700_s11 + $0x10] sm:$0xff] }
  0x2d   : > { %1104 = vmatmul.msk.f32.gmra.mxu1 %vm443_vm1, %v447_v13  ;;  %752 = vmatpush.msra.mxu0 %v1131_v53  ;;  %v820_v13 = vld [vmem:[%s1697_s8 + $0x10] sm:$0xff]  ;;  %v1153_v47 = vld [vmem:[%s1698_s9 + $0x48] sm:$0xff] }
  0x2e   : > { %1108 = vmatmul.msk.f32.gmra.mxu2 %vm443_vm1, %v514_v14 }
  0x2f   : > { %753 = vmatpush.msra.mxu0 %v1130_v56  ;;  %v998_v56 = vld [vmem:[%s1700_s11 + $0x18] sm:$0xff] }
  0x31   : > { %754 = vmatpush.msra.mxu0 %v1129_v59  ;;  %v995_v59 = vld [vmem:[%s1700_s11] sm:$0xff] }
  0x33   : > { %755 = vmatpush.msra.mxu0 %v1128_v62 }
  0xa1   : > { %v478_v15 = vpop.f32.mrf.mxu0 }
  0xa2   : > { %v507_v16 = vpop.f32.mrf.mxu1 }
  0xa3   : > { %v508_v24 = vadd.f32 %v507_v16, %v478_v15 }
  0xa9   : > { %v541_v21 = vpop.f32.mrf.mxu2  ;;  %v481_v22 = vpop.f32.mrf.mxu0 }
  0xaa   : > { %v510_v23 = vpop.f32.mrf.mxu1  ;;  %v547_v26 = vadd.f32 %v541_v21, %v508_v24  ;;  %v1141_v24 = vld [vmem:[%s1697_s8 + $0x60] sm:$0xff] }
  0xab   : > { %v511_v25 = vadd.f32 %v510_v23, %v481_v22  ;;  %v1134_v22 = vld [vmem:[%s1696_s7 + $0x4] sm:$0xf]  ;;  %v767_v23 = vld [vmem:[%s1696_s7] sm:$0xf] }
  0xac   : > { %v553_v31 = vadd.f32 %v1206_v27, %v547_v26  ;;  %v1139_v26 = vld [vmem:[%s1697_s8 + $0x50] sm:$0xff] }
  0xae   : > { %v555_v33 = vmax.f32 %v553_v31, 0.0  ;;  %v882_v31 = vld [vmem:[%s1698_s9 + $0x18] sm:$0xff] }
  0xb1   : > { %v544_v28 = vpop.f32.mrf.mxu2 }
  0xb2   : > { %v548_v29 = vadd.f32 %v544_v28, %v511_v25  ;;  %v1140_v25 = vld [vmem:[%s1697_s8 + $0x58] sm:$0xff]  ;;  %v1138_v28 = vld [vmem:[%s1697_s8 + $0x48] sm:$0xff] }
  0xb4   : > { %v554_v30 = vadd.f32 %v1206_v27, %v548_v29  ;;  %v819_v27 = vld [vmem:[%s1697_s8 + $0x8] sm:$0xff]  ;;  %v818_v29 = vld [vmem:[%s1697_s8] sm:$0xff] }
  0xb6   : > { %v556_v32 = vmax.f32 %v554_v30, 0.0  ;;  %v1137_v30 = vld [vmem:[%s1697_s8 + $0x40] sm:$0xff] }
  0xb8   : > { %575 = vmatpush.msra.mxu3 %v556_v32 }
  0xba   : > { %576 = vmatpush.msra.mxu3 %v555_v33 }
  0xbb   : > { %1109 = vmatmul.msk.f32.vlgmr.msra.gmra.mxu3 %vm443_vm1, %v557_v34 }
  0xbc   : > { %600 = vmatpush.msrb.mxu3 %v556_v32  ;;  %v1149_v32 = vld [vmem:[%s1698_s9 + $0x38] sm:$0xff] }
  0xbe   : > { %601 = vmatpush.msrb.mxu3 %v555_v33  ;;  %v881_v33 = vld [vmem:[%s1698_s9 + $0x10] sm:$0xff] }
  0xc0   : > { %723 = vmatpush.msra.mxu3 %v678_v52 }
  0xc2   : > { %724 = vmatpush.msra.mxu3 %v677_v55 }
  0xc3   : > { %1111 = vmatmul.msk.f32.vlgmr.msrb.gmra.mxu3 %vm443_vm1, %v1110_v35 }
  0xc4   : > { %725 = vmatpush.msra.mxu3 %v676_v58  ;;  %v996_v58 = vld [vmem:[%s1700_s11 + $0x8] sm:$0xff] }
  0xc6   : > { %726 = vmatpush.msra.mxu3 %v675_v61 }
  0xc8   : > { %837 = vmatpush.msrb.mxu3 %v825_v5 }
  0xca   : > { %838 = vmatpush.msrb.mxu3 %v824_v6  ;;  %v999_v6 = vld [vmem:[%s1701_s12] sm:$0x1] }
  0xcc   : > { %839 = vmatpush.msrb.mxu3 %v823_v8 }
  0xce   : > { %840 = vmatpush.msrb.mxu3 %v822_v11 }
  0xd0   : > { %841 = vmatpush.msrb.mxu3 %v821_v12 }
  0xd2   : > { %842 = vmatpush.msrb.mxu3 %v820_v13 }
  0xd4   : > { %843 = vmatpush.msrb.mxu3 %v819_v27 }
  0xd6   : > { %844 = vmatpush.msrb.mxu3 %v818_v29 }
 0x13e   : > { %v578_v48 = vpop.f32.mrf.mxu3 }
 0x146   : > { %v603_v49 = vpop.f32.mrf.mxu3 }
 0x147   : > { %v606_v50 = vmax.f32 %v578_v48, %v603_v49  ;;  %v1157_v48 = vld [vmem:[%s1698_s9 + $0x60] sm:$0xff] }
 0x148   : > { %v1152_v49 = vld [vmem:[%s1698_s9 + $0x40] sm:$0xff] }
 0x149   : > { %1112 = vmatmul.msk.f32.vlgmr.msrb.gmra.mxu0 %vm615_vm2, %v606_v50  ;;  %1121 = vmatmul.msk.f32.vlgmr.msrb.gmra.mxu1 %vm615_vm2, %v606_v50 }
 0x14a   : > { %866 = vmatpush.msrb.mxu0 %v1144_v7 }
 0x14c   : > { %867 = vmatpush.msrb.mxu0 %v1143_v9 }
 0x14e   : > { %868 = vmatpush.msrb.mxu0 %v1142_v10 }
 0x150   : > { %869 = vmatpush.msrb.mxu0 %v1141_v24 }
 0x152   : > { %870 = vmatpush.msrb.mxu0 %v1140_v25 }
 0x154   : > { %871 = vmatpush.msrb.mxu0 %v1139_v26 }
 0x156   : > { %872 = vmatpush.msrb.mxu0 %v1138_v28 }
 0x158   : > { %873 = vmatpush.msrb.mxu0 %v1137_v30 }
 0x1c6   : > { %v636_v63 = vpop.f32.mrf.mxu0  ;;  %v665_v0 = vpop.f32.mrf.mxu1 }
 0x1c7   : > { %v668_v1 = vmax.f32 %v636_v63, %v665_v0 }
 0x1c9   : > { %673 = vst.msk [vmem:[#allocation3 + $0x1] sm:$0xff] %vm672_vm4, %v668_v1 }
 0x1d0   : > { %v679_v2 = vld [vmem:[#allocation3 + $0x1] sm:$0xff] }
 0x1d1   : > { %v674_v3 = vld [vmem:[#allocation3] sm:$0xff]  ;;  %1126 = vmatmul.msk.f32.vlgmr.msrb.gmra.mxu2 %vm672_vm4, %v679_v2  ;;  %v992_v2 = vld [vmem:[%s1699_s10] sm:$0x1] }
 0x1d2   : > { %v731_v4 = vld [vmem:[#allocation3 + $0x2] sm:$0xff]  ;;  %1127 = vmatmul.msk.f32.vlgmr.msra.gmra.mxu3 %vm672_vm4, %v674_v3 }
 0x1d3   : > { %1132 = vmatmul.msk.f32.vlgmr.msra.gmra.mxu0 %vm672_vm4, %v731_v4  ;;  %1015 = vmatpush.msra.mxu3 %v998_v56 }
 0x1d5   : > { %1016 = vmatpush.msra.mxu3 %v997_v57 }
 0x1d7   : > { %1017 = vmatpush.msra.mxu3 %v996_v58 }
 0x1d9   : > { %1018 = vmatpush.msra.mxu3 %v995_v59 }
 0x250   : > { %v757_v18 = vpop.f32.mrf.mxu0 }
 0x254   : > { %v705_v14 = vpop.f32.mrf.mxu2 }
 0x255   : > { %v728_v15 = vpop.f32.mrf.mxu3 }
 0x256   : > { %v729_v16 = vadd.f32 %v728_v15, %v705_v14 }
 0x258   : > { %v760_v19 = vadd.f32 %v757_v18, %v729_v16 }
 0x25a   : > { %v765_v20 = vadd.f32 %v1207_v17, %v760_v19 }
 0x25c   : > { %v766_v21 = vmax.f32 %v765_v20, 0.0 }
 0x25e   : > { %787 = vmatpush.msra.mxu1 %v766_v21  ;;  %812 = vmatpush.msra.mxu2 %v766_v21 }
 0x25f   : > { %1135 = vmatmul.msk.f32.vlgmr.msra.gmra.mxu2 %vm768_vm5, %v1134_v22  ;;  %1133 = vmatmul.msk.f32.vlgmr.msra.gmra.mxu1 %vm768_vm5, %v767_v23 }
 0x260   : > { %926 = vmatpush.msrb.mxu2 %v882_v31  ;;  %904 = vmatpush.msrb.mxu1 %v1149_v32 }
 0x262   : > { %927 = vmatpush.msrb.mxu2 %v881_v33  ;;  %905 = vmatpush.msrb.mxu1 %v1148_v37 }
 0x264   : > { %928 = vmatpush.msrb.mxu2 %v880_v38  ;;  %906 = vmatpush.msrb.mxu1 %v1147_v39 }
 0x266   : > { %929 = vmatpush.msrb.mxu2 %v879_v40  ;;  %907 = vmatpush.msrb.mxu1 %v1146_v41 }
 0x268   : > { %983 = vmatpush.msra.mxu2 %v1160_v42  ;;  %954 = vmatpush.msra.mxu1 %v1155_v43 }
 0x26a   : > { %984 = vmatpush.msra.mxu2 %v1159_v44  ;;  %955 = vmatpush.msra.mxu1 %v1154_v45 }
 0x26c   : > { %985 = vmatpush.msra.mxu2 %v1158_v46  ;;  %956 = vmatpush.msra.mxu1 %v1153_v47 }
 0x26e   : > { %986 = vmatpush.msra.mxu2 %v1157_v48  ;;  %957 = vmatpush.msra.mxu1 %v1152_v49 }
 0x2dc   : > { %v789_v34 = vpop.f32.mrf.mxu1 }
 0x2e2   : > { %v814_v35 = vpop.f32.mrf.mxu2 }
 0x2e3   : > { %v817_v36 = vmax.f32 %v789_v34, %v814_v35 }
 0x2e5   : > { %1136 = vmatmul.msk.f32.vlgmr.msrb.gmra.mxu3 %vm615_vm2, %v817_v36  ;;  %1145 = vmatmul.msk.f32.vlgmr.msrb.gmra.mxu0 %vm615_vm2, %v817_v36 }
 0x362   : > { %v875_v51 = vpop.f32.mrf.mxu0 }
 0x368   : > { %v846_v50 = vpop.f32.mrf.mxu3 }
 0x369   : > { %v878_v52 = vmax.f32 %v846_v50, %v875_v51 }
 0x36b   : > { %v889_v53 = vrot.slane %v878_v52, 1  ;;  %1151 = vmatmul.msk.f32.vlgmr.msrb.gmra.mxu2 %vm672_vm4, %v878_v52  ;;  %v968_v54 = vrot.slane %v878_v52, 3  ;;  %v939_v55 = vrot.slane %v878_v52, 2 }
 0x36d   : > { %1150 = vmatmul.msk.f32.vlgmr.msrb.gmra.mxu1 %vm672_vm4, %v889_v53 }
 0x373   : > { %1161 = vmatmul.msk.f32.vlgmr.msra.gmra.mxu2 %vm672_vm4, %v968_v54 }
 0x375   : > { %1156 = vmatmul.msk.f32.vlgmr.msra.gmra.mxu1 %vm672_vm4, %v939_v55 }
 0x3ea   : > { %v909_v60 = vpop.f32.mrf.mxu1 }
 0x3ee   : > { %v931_v61 = vpop.f32.mrf.mxu2 }
 0x3ef   : > { %v932_v63 = vadd.f32 %v931_v61, %v909_v60 }
 0x3f2   : > { %v959_v62 = vpop.f32.mrf.mxu1 }
 0x3f3   : > { %v962_v0 = vadd.f32 %v959_v62, %v932_v63 }
 0x3f6   : > { %v988_v1 = vpop.f32.mrf.mxu2 }
 0x3f7   : > { %v991_v3 = vadd.f32 %v988_v1, %v962_v0 }
 0x3f9   : > { %v993_v4 = vadd.f32 %v992_v2, %v991_v3 }
 0x3fb   : > { %v994_v5 = vmax.f32 %v993_v4, 0.0 }
 0x3fd   : > { %1162 = vmatmul.msk.f32.vlgmr.msra.gmra.mxu3 %vm672_vm4, %v994_v5 }
 0x480   : > { %v1020_v7 = vpop.f32.mrf.mxu3 }
 0x481   : > { %v1021_v8 = vadd.f32 %v1020_v7, %v999_v6 }
 0x483   : > { %1024 = vst.msk [vmem:[%s432_s30] sm:$0x1] %vm1023_vm6, %v1021_v8 }
 0x484   : > { %1235 = shalt.err (!%p1232_p3)
}
 0x485   : > { %1166 = dma.vmem_to_hbm [thread:$0]  (%p1381_p5), %s1037_s15, 16, %s1039_s0, %s1026_s27  }
 0x486 PF: > { %p1172_p4 = scmp.ge.s32.totalorder %s1270_s28, 2  ;;  %s1050_s16 = sand.u32 1, %s1258_s25  }
 0x487   : > { %s1051_s24 = scalar_lea.sflag [#allocation5], %s1050_s16 }
 0x488   : > { %p1169_p7 = pnand %p1172_p4, %p1385_p6 }
 0x48a   : > { %p1170_p8 = pneg %p1169_p7 }
 0x48c   : > { %1253 = dma.done.wait (%p1170_p8), %s1051_s24, 16  }
 0x48d   : > { %1255 = vsyncadd (%p1170_p8), %s1051_s24, 4294967280  ;;  %s1712_s1 = sld [smem:[#allocation7_spill]]  ;;  %p23_p9 = scmp.ge.s32.totalorder %s1368_s14, 4  }
 0x48e   : > { %s1713_s27 = sld [smem:[#allocation8_spill]]  ;;  %s1714_s25 = smov %s1262_s26 }
 0x48f   : > { %s1716_s28 = smov %s1368_s14  ;;  %25 = sbr.rel (!%p23_p9) target bundleno = 6 (0x6), region = 118 }
 0x493   : > { %s1715_s26 = smov %s1712_s1 }
 0x494   :  { %1056 = vsyncpa [#allocation5], 1 }
 0x495   :  { %1058 = vsyncpa [#allocation5 + $0x1], 1 }

</bundles_post_ra>
